<compile_context>
chip_gen: v6e
topology: v6e:2x2x1
jax: 0.10.0
libtpu: 0.0.40
codegen_flags: <defaults>
</compile_context>

<pallas_src>
import functools

import jax
import jax.numpy as jnp
from jax.experimental import pallas as pl
from jax.experimental.pallas import tpu as pltpu


def _round_up(a: int, b: int) -> int:
    return (a + b - 1) // b * b


def _vmem_capacity_bytes() -> int:
    """Physical VMEM per TensorCore (64 MiB on v7x, 128 MiB on v5e/v6e)."""
    try:
        cap = int(pltpu.get_tpu_info().vmem_capacity_bytes)
        if cap > 0:
            return cap
    except Exception:
        pass
    return 128 << 20


def _working_set_bytes(tm, d_model, e_pad, x_item, w_item):
    """VMEM working set for one grid step, including in-kernel intermediates."""
    return (2 * tm * d_model * x_item        # double-buffered x tiles
            + 2 * d_model * e_pad * w_item   # resident W (2 pipeline buffers)
            + 2 * 8 * e_pad * 4              # resident bias block (sublane-padded)
            + 2 * tm * e_pad * 4             # double-buffered f32 output tiles
            + tm * d_model * 2               # in-kernel bf16 cast of the x tile
            + 3 * tm * e_pad * 4)            # logits / exp / prob temporaries


def _pick_tile_tokens(n, d_model, e_pad, x_item, w_item, *,
                      requested, budget_bytes, max_tile):
    """Largest token tile (multiple of 8) whose working set fits the budget."""
    if requested is not None:
        tm = max(8, _round_up(int(requested), 8))
    else:
        tm = max_tile
        while tm > 8:
            if _working_set_bytes(tm, d_model, e_pad, x_item, w_item) <= budget_bytes:
                break
            tm //= 2
        tm = max(8, tm)
    tm = min(tm, _round_up(n, 8))
    # Megacore balance / pipeline overlap: prefer >= 4 grid steps when there
    # are enough tokens (2-3 steps leaves one v7x TensorCore idle half the time).
    if n >= 32 and pl.cdiv(n, tm) < 4:
        tm = max(8, _round_up(pl.cdiv(n, 4), 8))
    return tm


def _tutel_gate_kernel(x_ref, w_ref, b_ref, o_ref, *, n_expert, compute_dtype):
    # x_ref: (tm, d_model) native dtype (streamed as-is from HBM)
    # w_ref: (d_model, e_pad) MXU dtype — pre-cast / pre-transposed in wrapper
    # b_ref: (1, e_pad) f32, -inf in padded lanes
    # o_ref: (tm, n_expert) f32
    x = x_ref[...].astype(compute_dtype)     # cheap on-tile cast, no HBM pass
    logits = jnp.dot(x, w_ref[...], preferred_element_type=jnp.float32) + b_ref[...]
    # Numerically-stable softmax over the expert (lane) axis.  Padded lanes
    # carry a -inf bias -> exp == 0 -> they never touch the denominator.
    # NOTE: garbage rows of a ragged last tile may produce NaN here; they are
    # masked on writeback, so this is benign.
    m = jnp.max(logits, axis=-1, keepdims=True)
    p = jnp.exp(logits - m)
    denom = jnp.sum(p, axis=-1, keepdims=True)
    probs = p / denom        # exact normalization (approx reciprocal broke
                             # the row-sum-to-1 invariant)
    o_ref[...] = probs[:, :n_expert].astype(o_ref.dtype)


def tutel_gate_forward(x, weight, bias, *, tile_tokens=None,
                       mxu_dtype=jnp.bfloat16):
    """TutelGate.forward: returns (None, softmax(x.float() @ W^T + b, axis=1)).

    x:      (N, d_model), any float dtype (streamed natively, cast on-chip)
    weight: (tot_expert, d_model)  nn.Linear weight layout
    bias:   (tot_expert,)
    mxu_dtype: MXU operand dtype (bf16 default; f32 accumulation either way).
    """
    n, d_model = x.shape
    e = weight.shape[0]
    assert weight.shape == (e, d_model)
    assert bias.shape == (e,)

    # Pad the expert / lane dimension to 128 for the in-VMEM logits/softmax.
    # Zero weight rows + -inf bias entries make padded probabilities exactly 0.
    e_pad = _round_up(max(e, 128), 128)
    w = weight
    b = bias.astype(jnp.float32)
    if e_pad != e:
        w = jnp.pad(w, ((0, e_pad - e), (0, 0)))
        b = jnp.pad(b, (0, e_pad - e), constant_values=-jnp.inf)
    # One-time wrapper prep of the tiny, grid-resident weight: cast to the MXU
    # operand dtype and transpose so the kernel uses a plain NN matmul.
    w_t = jnp.transpose(w).astype(mxu_dtype)          # (d_model, e_pad)
    b2 = b.reshape(1, e_pad)

    x_item = jnp.dtype(x.dtype).itemsize
    w_item = jnp.dtype(mxu_dtype).itemsize

    cap = _vmem_capacity_bytes()
    vmem_ceiling = min(cap - (8 << 20), 100 << 20)    # ~56 MiB v7x, 100 MiB v5e/v6e
    budget = min(40 << 20, vmem_ceiling - (8 << 20))
    max_tile = 256 if d_model >= 8192 else 512

    tm = _pick_tile_tokens(n, d_model, e_pad, x_item, w_item,
                           requested=tile_tokens, budget_bytes=budget,
                           max_tile=max_tile)
    grid = (pl.cdiv(n, tm),)

    needed = _working_set_bytes(tm, d_model, e_pad, x_item, w_item)
    vmem_limit = int(max(32 << 20, min(needed + (4 << 20), vmem_ceiling)))

    cost = pl.CostEstimate(
        flops=2 * n * d_model * e_pad,
        transcendentals=n * e_pad,
        bytes_accessed=(n * d_model * x_item          # x read
                        + d_model * e_pad * w_item    # W read (resident)
                        + n * e * 4),                 # output write
    )

    kernel = functools.partial(_tutel_gate_kernel, n_expert=e,
                               compute_dtype=mxu_dtype)

    out = pl.pallas_call(
        kernel,
        out_shape=jax.ShapeDtypeStruct((n, e), jnp.float32),
        grid_spec=pltpu.PrefetchScalarGridSpec(
            num_scalar_prefetch=0,
            grid=grid,
            in_specs=[
                pl.BlockSpec((tm, d_model), lambda i: (i, 0)),      # streamed x
                pl.BlockSpec((d_model, e_pad), lambda i: (0, 0)),   # resident W^T
                pl.BlockSpec((1, e_pad), lambda i: (0, 0)),         # resident bias
            ],
            out_specs=pl.BlockSpec((tm, e), lambda i: (i, 0)),      # direct (N, e)
        ),
        compiler_params=pltpu.CompilerParams(
            dimension_semantics=("parallel",),
            vmem_limit_bytes=vmem_limit),
        cost_estimate=cost,
    )(x, w_t, b2)

    return None, out


def _reference(x, weight, bias):
    logits = (x.astype(jnp.float32) @ weight.astype(jnp.float32).T
              + bias.astype(jnp.float32))
    return jax.nn.softmax(logits, axis=1)


if __name__ == "__main__":
    # Small config consistent with TutelGate.__init__:
    d_model = 32
    num_expert = 4
    world_size = 2
    tot_expert = num_expert * world_size   # 8
    n_tokens = 16

    key = jax.random.PRNGKey(0)
    kx, kw, kb = jax.random.split(key, 3)

    x = jax.random.normal(kx, (n_tokens, d_model), dtype=jnp.float32)
    weight = (jax.random.normal(kw, (tot_expert, d_model), dtype=jnp.float32)
              * (1.0 / jnp.sqrt(d_model)))
    bias = jax.random.normal(kb, (tot_expert,), dtype=jnp.float32) * 0.01

    none_out, probs = tutel_gate_forward(x, weight, bias)
    probs = jax.block_until_ready(probs)
    assert none_out is None
    assert probs.shape == (n_tokens, tot_expert)
    assert probs.dtype == jnp.float32

    # Exact normalization: rows sum to 1 (the approx-reciprocal bug is gone).
    assert jnp.allclose(jnp.sum(probs, axis=1), 1.0, atol=1e-4)

    # Matched-precision reference: same bf16-rounded operands, f32 accumulation.
    ref_bf16 = _reference(x.astype(jnp.bfloat16).astype(jnp.float32),
                          weight.astype(jnp.bfloat16).astype(jnp.float32), bias)
    assert jnp.allclose(probs, ref_bf16, atol=1e-4, rtol=1e-4)

    # Full-f32 module reference (x.float() @ W.float().T): bf16 MXU operands
    # introduce only a small, gating-irrelevant deviation.
    ref_f32 = _reference(x, weight, bias)
    assert jnp.allclose(probs, ref_f32, atol=2e-2, rtol=2e-2)

    # bf16 activations: the dominant HBM stream (x) stays at half the bytes;
    # accumulation remains f32 on-chip.
    x_bf16 = x.astype(jnp.bfloat16)
    _, probs_bf16 = tutel_gate_forward(x_bf16, weight, bias)
    probs_bf16 = jax.block_until_ready(probs_bf16)
    assert probs_bf16.shape == (n_tokens, tot_expert)
    assert jnp.allclose(probs_bf16, ref_bf16, atol=1e-4, rtol=1e-4)
    assert jnp.allclose(jnp.sum(probs_bf16, axis=1), 1.0, atol=1e-4)

    print("KERNEL_OK")
</pallas_src>

<mosaic_0001>
module attributes {stable_mosaic.version = 11 : i64} {
  func.func @_tutel_gate_kernel(%arg0: i32, %arg1: memref<16x32xf32, #tpu.memory_space<vmem>>, %arg2: memref<32x128xbf16, #tpu.memory_space<vmem>>, %arg3: memref<1x128xf32, #tpu.memory_space<vmem>>, %arg4: memref<16x8xf32, #tpu.memory_space<vmem>>) attributes {dimension_semantics = [#tpu.dimension_semantics<parallel>], iteration_bounds = array<i64: 1>, scalar_prefetch = 0 : i64, scratch_operands = 0 : i64, tpu.core_type = #tpu.core_type<tc>, window_params = [{transform_indices = @transform_0, window_bounds = array<i64: 16, 32>}, {pipeline_mode = #tpu.pipeline_mode<synchronous>, transform_indices = @transform_1, window_bounds = array<i64: 32, 128>}, {pipeline_mode = #tpu.pipeline_mode<synchronous>, transform_indices = @transform_2, window_bounds = array<i64: 1, 128>}, {transform_indices = @transform_3, window_bounds = array<i64: 16, 8>}]} {
    %c0 = arith.constant 0 : index
    %c0_0 = arith.constant 0 : index
    %0 = vector.load %arg1[%c0, %c0_0] : memref<16x32xf32, #tpu.memory_space<vmem>>, vector<16x32xf32>
    %1 = arith.truncf %0 : vector<16x32xf32> to vector<16x32xbf16>
    %c0_1 = arith.constant 0 : index
    %c0_2 = arith.constant 0 : index
    %2 = vector.load %arg2[%c0_1, %c0_2] : memref<32x128xbf16, #tpu.memory_space<vmem>>, vector<32x128xbf16>
    %cst = arith.constant dense<0.000000e+00> : vector<16x128xf32>
    %3 = tpu.matmul %1, %2, %cst {dimension_numbers = #tpu.dot_dimension_numbers<[1], [0], [0], [1], [0, 0, 1, 1], [], []>} : vector<16x32xbf16>, vector<32x128xbf16>, vector<16x128xf32> -> vector<16x128xf32>
    %c0_3 = arith.constant 0 : index
    %c0_4 = arith.constant 0 : index
    %4 = vector.load %arg3[%c0_3, %c0_4] : memref<1x128xf32, #tpu.memory_space<vmem>>, vector<1x128xf32>
    %5 = vector.broadcast %4 : vector<1x128xf32> to vector<16x128xf32>
    %6 = arith.addf %3, %5 : vector<16x128xf32>
    %cst_5 = arith.constant dense<0xFF800000> : vector<16xf32>
    %7 = vector.multi_reduction <maximumf>, %6, %cst_5 [1] : vector<16x128xf32> to vector<16xf32>
    %8 = vector.shape_cast %7 : vector<16xf32> to vector<16x1xf32>
    %9 = vector.broadcast %8 : vector<16x1xf32> to vector<16x128xf32>
    %10 = arith.subf %6, %9 : vector<16x128xf32>
    %11 = math.exp %10 : vector<16x128xf32>
    %cst_6 = arith.constant dense<0.000000e+00> : vector<16xf32>
    %12 = vector.multi_reduction <add>, %11, %cst_6 [1] : vector<16x128xf32> to vector<16xf32>
    %13 = vector.shape_cast %12 : vector<16xf32> to vector<16x1xf32>
    %14 = vector.broadcast %13 : vector<16x1xf32> to vector<16x128xf32>
    %15 = arith.divf %11, %14 : vector<16x128xf32>
    %16 = vector.extract_strided_slice %15 {offsets = [0, 0], sizes = [16, 8], strides = [1, 1]} : vector<16x128xf32> to vector<16x8xf32>
    %c0_7 = arith.constant 0 : index
    %c0_8 = arith.constant 0 : index
    %17 = vector.load %arg4[%c0_7, %c0_8] : memref<16x8xf32, #tpu.memory_space<vmem>>, vector<16x8xf32>
    tpu.vector_store %arg4[%c0_7, %c0_8], %16 {strides = array<i32>} : memref<16x8xf32, #tpu.memory_space<vmem>>, vector<16x8xf32>,
    return
  }
  func.func @transform_0(%arg0: i32) -> (i32, i32) {
    %c0_i32 = arith.constant 0 : i32
    %c0_i32_0 = arith.constant 0 : i32
    return %arg0, %c0_i32 : i32, i32
  }
  func.func @transform_1(%arg0: i32) -> (i32, i32) {
    %c0_i32 = arith.constant 0 : i32
    %c0_i32_0 = arith.constant 0 : i32
    %c0_i32_1 = arith.constant 0 : i32
    return %c0_i32, %c0_i32_0 : i32, i32
  }
  func.func @transform_2(%arg0: i32) -> (i32, i32) {
    %c0_i32 = arith.constant 0 : i32
    %c0_i32_0 = arith.constant 0 : i32
    %c0_i32_1 = arith.constant 0 : i32
    return %c0_i32, %c0_i32_0 : i32, i32
  }
  func.func @transform_3(%arg0: i32) -> (i32, i32) {
    %c0_i32 = arith.constant 0 : i32
    %c0_i32_0 = arith.constant 0 : i32
    return %arg0, %c0_i32 : i32, i32
  }
}

</mosaic_0001>

<bundles_post_ra>
// kernel: tpu_custom_call.1
= control target key start
LH: loop header
LB: loop body
LE: loop exit
PB: predicated region body
PF: predicated region fallthrough
CT: control target
= control target key end

     0   :  { %8 = vsyncpa [#allocation3], 0  ;;  %s261_s0 = inlined_call_operand.hbm [shape: f32[16,32], index: 0, kind: input, shape index: {}]   ;;  %s262_s1 = inlined_call_operand.hbm [shape: bf16[32,128], index: 1, kind: input, shape index: {}]   ;;  %s263_s2 = inlined_call_operand.vmem [shape: f32[1,128], index: 2, kind: input, shape index: {}]   ;;  %s264_s3 = inlined_call_operand.vmem [shape: f32[16,8], index: 3, kind: output, shape index: {}]  }
   0x1   :  { %9 = vsyncpa [#allocation5], 0  ;;  %s218_s12 = smov [#allocation2]  }
   0x2   :  { %s15_s13 = sshll.u32 %s218_s12, 4  ;;  %s16_s13 = int_to_ptr.vmem [resolvable:$true] %s15_s13 }
   0x3   :  { %s182_s14 = scalar_lea.vmem %s16_s13, 256  ;;  %p187_p1 = scmp.lt.s32.totalorder %s16_s13, %s16_s13 }
   0x4   :  { %p183_p0 = scmp.ne.s32.totalorder %s16_s13, %s182_s14  ;;  %p188_p2 = scmp.lt.s32.totalorder %s182_s14, %s182_s14 }
   0x6   :  { %p189_p3 = por %p188_p2, %p187_p1 }
   0x8   :  { %p190_p4 = pnand %p189_p3, %p183_p0 }
   0xa   :  { %193 = shalt.err (!%p190_p4)
}
   0xb   :  { %s219_s15 = smov 128   ;;  %s220_s16 = smov 8  }
   0xc   :  { %21 = dma.hbm_to_vmem [thread:$0]  %s261_s0, 256, %s16_s13, [#allocation3], %s219_s15, %s219_s15, %s220_s16  }
   0xd   :  { %s221_s19 = smov [#allocation4]  }
   0xe   :  { %s27_s20 = sshll.u32 %s221_s19, 4  ;;  %s28_s20 = int_to_ptr.vmem [resolvable:$true] %s27_s20 }
   0xf   :  { %s202_s21 = scalar_lea.vmem %s28_s20, 256  ;;  %p207_p6 = scmp.lt.s32.totalorder %s28_s20, %s28_s20 }
  0x10   :  { %p203_p5 = scmp.ne.s32.totalorder %s28_s20, %s202_s21  ;;  %p208_p7 = scmp.lt.s32.totalorder %s202_s21, %s202_s21 }
  0x12   :  { %p209_p8 = por %p208_p7, %p207_p6 }
  0x14   :  { %p210_p9 = pnand %p209_p8, %p203_p5 }
  0x16   :  { %213 = shalt.err (!%p210_p9)
}
  0x17   :  { %s222_s22 = smov 64   ;;  %s223_s23 = smov 4  }
  0x18   :  { %33 = dma.hbm_to_vmem [thread:$0]  %s262_s1, 256, %s28_s20, [#allocation5], %s222_s22, %s222_s22, %s223_s23  }
  0x19   :  { %214 = dma.done.wait [#allocation3], 256  }
  0x1a   :  { %215 = vsyncadd [#allocation3], 4294967040 }
  0x1b   :  { %216 = dma.done.wait [#allocation5], 256  }
  0x1c   :  { %217 = vsyncadd [#allocation5], 4294967040  ;;  %v224_v0 = vmov 0.0   ;;  %vm225_vm0 = vmmov 0   ;;  %v164_v1 = vld [vmem:[#allocation4 + $0x8] sm:$0xff]   ;;  %v165_v2 = vld [vmem:[#allocation4] sm:$0xff]  }
  0x1d   :  { %148 = vmatprep.subr.bf16.mxu0 %v224_v0  ;;  %152 = vmatprep.mubr.msk.bf16.mxu0 %vm225_vm0, %v224_v0  ;;  %v43_v3 = vld [vmem:[#allocation2] sm:$0xff]  ;;  %v44_v4 = vld [vmem:[#allocation2 + $0x8] sm:$0xff]  ;;  %vm69_vm1 = vcmask 261120   ;;  %vm132_vm2 = vcmask 64512  }
  0x1e   :  { %149 = vmatpush3.bf16.msra.mxu0 %v164_v1  ;;  %v45_v5 = vpack.c.bf16 %v44_v4, %v43_v3  ;;  %v141_v6 = vld [vmem:[%s263_s2] ss:$0 sm:$0xff] }
  0x1f   :  { %150 = vmatprep.subr.bf16.mxu0 %v224_v0 }
  0x22   :  { %151 = vmatpush3.bf16.msra.mxu0 %v165_v2 }
  0x25   :  { %153 = vmatmul.mubr.msk.bf16.vlgmr.msra.gmra.mxu0 %vm69_vm1, %v45_v5 }
  0xe5   :  { %v107_v7 = vpop.f32.mrf.mxu0 }
  0xe6   :  { %v108_v8 = vadd.f32 %v141_v6, %v107_v7 }
  0xe7   :  { %v154_v9 = vpop.f32.mrf.mxu0 }
  0xe8   :  { %114 = vmax.xlane.f32.xlu0 %v108_v8 }
  0xe9   :  { %v110_v10 = vpop.f32.mrf.mxu0 }
  0xea   :  { %v111_v11 = vadd.f32 %v141_v6, %v110_v10 }
  0xeb   :  { %v155_v12 = vpop.f32.mrf.mxu0 }
  0xec   :  { %116 = vmax.xlane.f32.xlu0 %v111_v11 }
 0x171   :  { %v115_v13 = vpop.xlane.xlu0 %114 }
 0x172   :  { %v118_v14 = vsub.f32 %v108_v8, %v115_v13 }
 0x174   :  { %v120_v15 = vmul.f32 1.442695, %v118_v14 }
 0x175   :  { %v117_v16 = vpop.xlane.xlu0 %116 }
 0x176   :  { %166 = vpow2.f32 %v120_v15  ;;  %v119_v17 = vsub.f32 %v111_v11, %v117_v16 }
 0x178   :  { %v122_v18 = vmul.f32 1.442695, %v119_v17 }
 0x17a   :  { %168 = vpow2.f32 %v122_v18 }
 0x183   :  { %v167_v19 = vpop.eup %166 }
 0x184   :  { %124 = vadd.xlane.f32.xlu1 %v167_v19 }
 0x187   :  { %v169_v20 = vpop.eup %168 }
 0x188   :  { %126 = vadd.xlane.f32.xlu1 %v169_v20 }
 0x20d   :  { %v125_v21 = vpop.xlane.xlu1 %124 }
 0x20e   :  { %170 = vrcp.f32 %v125_v21 }
 0x211   :  { %v127_v22 = vpop.xlane.xlu1 %126 }
 0x212   :  { %172 = vrcp.f32 %v127_v22 }
 0x21b   :  { %v171_v23 = vpop.eup %170 }
 0x21c   :  { %v129_v24 = vmul.f32 %v171_v23, %v167_v19 }
 0x21e   :  { %133 = vst.msk [vmem:[%s264_s3] sm:$0xff] %vm132_vm2, %v129_v24 }
 0x21f   :  { %v173_v25 = vpop.eup %172 }
 0x220   :  { %v131_v26 = vmul.f32 %v173_v25, %v169_v20 }
 0x222   :  { %134 = vst.msk [vmem:[%s264_s3 + $0x8] sm:$0xff] %vm132_vm2, %v131_v26 }
 0x223   :  { %139 = vsyncpa [#allocation3], 1 }
 0x224   :  { %140 = vsyncpa [#allocation5], 1 }

</bundles_post_ra>
